<compile_context>
chip_gen: v6e
topology: v6e:2x2x1
jax: 0.10.0
libtpu: 0.0.40
codegen_flags: <defaults>
</compile_context>

<pallas_src>
import jax
import jax.numpy as jnp
from jax import lax
from jax.experimental import pallas as pl
from jax.experimental.pallas import tpu as pltpu
import numpy as np


def _make_mc_kernel(lamb, inv_d):
    def mc_kernel(pca_ref, uni_ref, pn_ref, px_ref, xsq_ref, g_ref,
                  loss_ref, like_ref):
        # pca_ref : (Bt, 1, E)   uni_ref : (Bt, S, E)
        # pn_ref  : (Bt, 1, E)   px_ref  : (Bt, 1, E)   xsq_ref : (Bt, 1, 1)
        # g_ref   : (E, E)       loss_ref/like_ref : (Bt, S, 1)
        f32 = jnp.float32
        pca = pca_ref[...]                                  # (Bt, 1, E)
        uni = uni_ref[...]                                  # (Bt, S, E)
        bt, s, e = uni.shape

        samples = (pca > uni).astype(f32)                   # (Bt, S, E)
        coeff = samples * pn_ref[...]                       # (Bt, S, E)

        # Quadratic form: ||recon||^2 per sample = diag(coeff @ G @ coeff^T).
        g = jnp.broadcast_to(g_ref[...], (bt, e, e))        # (Bt, E, E)
        cg = jnp.einsum('bse,bef->bsf', coeff, g,
                        preferred_element_type=f32)         # (Bt, S, E)
        recon_sq = jnp.sum(cg * coeff, axis=-1, keepdims=True)         # (Bt,S,1)
        cross = jnp.sum(coeff * px_ref[...], axis=-1, keepdims=True)   # (Bt,S,1)
        regular = jnp.sum(samples, axis=-1, keepdims=True)              # (Bt,S,1)

        recon_loss = (recon_sq - 2.0 * cross + xsq_ref[...]) * inv_d    # (Bt,S,1)
        loss_ref[...] = recon_loss + lamb * regular

        # log|1 - s - p| == s*log(p) + (1-s)*log1p(-p)  for s in {0,1}
        logp = jnp.log(pca)                                 # (Bt, 1, E)
        log1mp = jnp.log1p(-pca)                            # (Bt, 1, E)
        like_ref[...] = (
            jnp.sum(samples * (logp - log1mp), axis=-1, keepdims=True)
            + jnp.sum(log1mp, axis=-1, keepdims=True))      # (Bt, S, 1)

    return mc_kernel


def mc_loss_origin_forward(pca_act, images, images_noise, eig_vec, avg_face,
                           uniform, lamb):
    """Reproduces MCLoss_origin.forward.

    pca_act      : (B, num_eig)   float32, values in (0, 1)
    images       : (B, 1, H, W)   float32
    images_noise : (B, 1, H, W)   float32
    eig_vec      : (D, num_eig)   float32, D = H*W
    avg_face     : (D,)           float32
    uniform      : (B, num_sample, num_eig) float32, the torch.rand draws
    returns (mc_loss, loss_mean) scalars.
    """
    B = images.shape[0]
    H, W = images.shape[2], images.shape[3]
    D = H * W
    S, E = uniform.shape[1], uniform.shape[2]
    f32 = jnp.float32
    hp = lax.Precision.HIGHEST

    avg = avg_face.reshape(1, D).astype(f32)
    x = images.reshape(B, D).astype(f32) - avg               # image  - avg_face
    xn = images_noise.reshape(B, D).astype(f32) - avg        # image_noise - avg_face
    eig = eig_vec.astype(f32)

    # Hoisted batched projections / Gram matrix (one MXU-friendly matmul each).
    proj_n = jnp.dot(xn, eig, precision=hp)                  # (B, E)
    proj_x = jnp.dot(x, eig, precision=hp)                   # (B, E)
    x_sq = jnp.sum(x * x, axis=1, keepdims=True)             # (B, 1)
    gram = jnp.dot(eig.T, eig, precision=hp)                 # (E, E)

    pca3 = pca_act.astype(f32).reshape(B, 1, E)
    pn3 = proj_n.reshape(B, 1, E)
    px3 = proj_x.reshape(B, 1, E)
    xsq3 = x_sq.reshape(B, 1, 1)
    uni = uniform.astype(f32)

    # Batch tiling: B_TILE images per grid step.
    if B <= 8:
        b_tile, b_pad = B, B
    else:
        b_tile = 8
        b_pad = ((B + 7) // 8) * 8
        if b_pad != B:
            pad = b_pad - B
            # pad pca with 0.5 so log() stays finite in discarded rows
            pca3 = jnp.pad(pca3, ((0, pad), (0, 0), (0, 0)), constant_values=0.5)
            pn3 = jnp.pad(pn3, ((0, pad), (0, 0), (0, 0)))
            px3 = jnp.pad(px3, ((0, pad), (0, 0), (0, 0)))
            xsq3 = jnp.pad(xsq3, ((0, pad), (0, 0), (0, 0)))
            uni = jnp.pad(uni, ((0, pad), (0, 0), (0, 0)))

    kernel = _make_mc_kernel(float(lamb), 1.0 / float(D))

    grid_spec = pltpu.PrefetchScalarGridSpec(
        num_scalar_prefetch=0,
        grid=(b_pad // b_tile,),
        in_specs=[
            pl.BlockSpec((b_tile, 1, E), lambda i: (i, 0, 0)),   # pca_act
            pl.BlockSpec((b_tile, S, E), lambda i: (i, 0, 0)),   # uniform
            pl.BlockSpec((b_tile, 1, E), lambda i: (i, 0, 0)),   # proj_noise
            pl.BlockSpec((b_tile, 1, E), lambda i: (i, 0, 0)),   # proj_x
            pl.BlockSpec((b_tile, 1, 1), lambda i: (i, 0, 0)),   # ||x||^2
            pl.BlockSpec((E, E), lambda i: (0, 0)),              # Gram (grid-invariant)
        ],
        out_specs=[
            pl.BlockSpec((b_tile, S, 1), lambda i: (i, 0, 0)),   # losses
            pl.BlockSpec((b_tile, S, 1), lambda i: (i, 0, 0)),   # likehoods
        ],
    )

    losses_b, likes_b = pl.pallas_call(
        kernel,
        out_shape=(jax.ShapeDtypeStruct((b_pad, S, 1), f32),
                   jax.ShapeDtypeStruct((b_pad, S, 1), f32)),
        grid_spec=grid_spec,
        compiler_params=pltpu.CompilerParams(
            dimension_semantics=("parallel",)),
    )(pca3, uni, pn3, px3, xsq3, gram)

    # (B_pad, S, 1) -> (S, B), matching torch's losses[:, i] layout.
    losses = losses_b[:B, :, 0].T
    likehoods = likes_b[:B, :, 0].T

    loss_mean = losses.mean()
    mc_loss = ((losses - loss_mean) * likehoods).sum(0).mean()
    return mc_loss, loss_mean


def _reference_forward(pca_act, images, images_noise, eig_vec, avg_face,
                       uniform, lamb):
    """Plain-JAX reference using the direct (full-reconstruction) math."""
    B = images.shape[0]
    H, W = images.shape[2], images.shape[3]
    D = H * W
    hp = lax.Precision.HIGHEST
    img = images.reshape(B, D) - avg_face[None, :]
    imgn = images_noise.reshape(B, D) - avg_face[None, :]
    samples = (pca_act[:, None, :] > uniform).astype(jnp.float32)   # (B, S, E)
    proj = jnp.dot(imgn, eig_vec, precision=hp)                     # (B, E)
    coeff = samples * proj[:, None, :]                              # (B, S, E)
    recon = jnp.einsum('bse,de->bsd', coeff, eig_vec, precision=hp) # (B, S, D)
    recon_loss = jnp.mean((recon - img[:, None, :]) ** 2, axis=2)   # (B, S)
    regular = samples.sum(2)
    losses = (recon_loss + lamb * regular).T                        # (S, B)
    prob = jnp.abs(1.0 - samples - pca_act[:, None, :])
    likehoods = jnp.sum(jnp.log(prob), axis=2).T                    # (S, B)
    loss_mean = losses.mean()
    mc_loss = ((losses - loss_mean) * likehoods).sum(0).mean()
    return mc_loss, loss_mean


if __name__ == "__main__":
    # Small, deterministic setup.
    B, H, W = 2, 16, 16
    D = H * W
    num_eig = 32
    num_sample = 30
    lamb = 0.01

    key = jax.random.PRNGKey(0)
    k1, k2, k3, k4, k5, k6 = jax.random.split(key, 6)

    # Synthetic, deterministic "eigen data".
    eig_vec = jax.random.normal(k1, (D, num_eig), dtype=jnp.float32)
    eig_vec = eig_vec / jnp.linalg.norm(eig_vec, axis=0, keepdims=True)
    avg_face = 0.1 * jax.random.normal(k2, (D,), dtype=jnp.float32)

    pca_act = jax.random.uniform(k3, (B, num_eig), dtype=jnp.float32,
                                 minval=0.05, maxval=0.95)
    images = jax.random.normal(k4, (B, 1, H, W), dtype=jnp.float32)
    images_noise = images + 0.05 * jax.random.normal(k5, (B, 1, H, W),
                                                     dtype=jnp.float32)
    uniform = jax.random.uniform(k6, (B, num_sample, num_eig), dtype=jnp.float32)

    mc_loss, loss_mean = mc_loss_origin_forward(
        pca_act, images, images_noise, eig_vec, avg_face, uniform, lamb)
    mc_loss, loss_mean = jax.block_until_ready((mc_loss, loss_mean))

    ref_mc, ref_mean = _reference_forward(
        pca_act, images, images_noise, eig_vec, avg_face, uniform, lamb)
    # Slightly looser atol than before: the Gram-form recon loss is exact math
    # but numerically differs a little (benign cancellation) from the direct
    # ||recon - x||^2 reference.
    np.testing.assert_allclose(np.asarray(mc_loss), np.asarray(ref_mc),
                               rtol=5e-4, atol=1e-3)
    np.testing.assert_allclose(np.asarray(loss_mean), np.asarray(ref_mean),
                               rtol=5e-4, atol=1e-3)

    print("KERNEL_OK")
</pallas_src>

<mosaic_0001>
module attributes {stable_mosaic.version = 11 : i64} {
  func.func @mc_kernel(%arg0: i32, %arg1: memref<2x1x32xf32, #tpu.memory_space<vmem>>, %arg2: memref<2x30x32xf32, #tpu.memory_space<vmem>>, %arg3: memref<2x1x32xf32, #tpu.memory_space<vmem>>, %arg4: memref<2x1x32xf32, #tpu.memory_space<vmem>>, %arg5: memref<2x1x1xf32, #tpu.memory_space<vmem>>, %arg6: memref<32x32xf32, #tpu.memory_space<vmem>>, %arg7: memref<2x30x1xf32, #tpu.memory_space<vmem>>, %arg8: memref<2x30x1xf32, #tpu.memory_space<vmem>>) attributes {dimension_semantics = [#tpu.dimension_semantics<parallel>], iteration_bounds = array<i64: 1>, scalar_prefetch = 0 : i64, scratch_operands = 0 : i64, tpu.core_type = #tpu.core_type<tc>, window_params = [{transform_indices = @transform_0, window_bounds = array<i64: 2, 1, 32>}, {transform_indices = @transform_1, window_bounds = array<i64: 2, 30, 32>}, {transform_indices = @transform_2, window_bounds = array<i64: 2, 1, 32>}, {transform_indices = @transform_3, window_bounds = array<i64: 2, 1, 32>}, {transform_indices = @transform_4, window_bounds = array<i64: 2, 1, 1>}, {pipeline_mode = #tpu.pipeline_mode<synchronous>, transform_indices = @transform_5, window_bounds = array<i64: 32, 32>}, {transform_indices = @transform_6, window_bounds = array<i64: 2, 30, 1>}, {transform_indices = @transform_7, window_bounds = array<i64: 2, 30, 1>}]} {
    %c0 = arith.constant 0 : index
    %c0_0 = arith.constant 0 : index
    %c0_1 = arith.constant 0 : index
    %0 = vector.load %arg1[%c0, %c0_0, %c0_1] : memref<2x1x32xf32, #tpu.memory_space<vmem>>, vector<2x1x32xf32>
    %c0_2 = arith.constant 0 : index
    %c0_3 = arith.constant 0 : index
    %c0_4 = arith.constant 0 : index
    %1 = vector.load %arg2[%c0_2, %c0_3, %c0_4] : memref<2x30x32xf32, #tpu.memory_space<vmem>>, vector<2x30x32xf32>
    %2 = vector.broadcast %0 : vector<2x1x32xf32> to vector<2x30x32xf32>
    %3 = arith.cmpf ogt, %2, %1 : vector<2x30x32xf32>
    %4 = arith.extui %3 : vector<2x30x32xi1> to vector<2x30x32xi32>
    %5 = arith.sitofp %4 : vector<2x30x32xi32> to vector<2x30x32xf32>
    %c0_5 = arith.constant 0 : index
    %c0_6 = arith.constant 0 : index
    %c0_7 = arith.constant 0 : index
    %6 = vector.load %arg3[%c0_5, %c0_6, %c0_7] : memref<2x1x32xf32, #tpu.memory_space<vmem>>, vector<2x1x32xf32>
    %7 = vector.broadcast %6 : vector<2x1x32xf32> to vector<2x30x32xf32>
    %8 = arith.mulf %5, %7 : vector<2x30x32xf32>
    %c0_8 = arith.constant 0 : index
    %c0_9 = arith.constant 0 : index
    %9 = vector.load %arg6[%c0_8, %c0_9] : memref<32x32xf32, #tpu.memory_space<vmem>>, vector<32x32xf32>
    %10 = vector.shape_cast %9 : vector<32x32xf32> to vector<1x32x32xf32>
    %11 = vector.broadcast %10 : vector<1x32x32xf32> to vector<2x32x32xf32>
    "tpu.trace_start"() <{level = 10 : i32, message = "bse,bef->bsf"}> : () -> ()
    %cst = arith.constant dense<0.000000e+00> : vector<2x30x32xf32>
    %12 = tpu.matmul %8, %11, %cst {dimension_numbers = #tpu.dot_dimension_numbers<[2], [1], [1], [2], [0, 0, 0, 1, 1, 2], [0], [0]>} : vector<2x30x32xf32>, vector<2x32x32xf32>, vector<2x30x32xf32> -> vector<2x30x32xf32>
    "tpu.trace_stop"() : () -> ()
    %13 = arith.mulf %12, %8 : vector<2x30x32xf32>
    %cst_10 = arith.constant dense<0.000000e+00> : vector<2x30xf32>
    %14 = vector.multi_reduction <add>, %13, %cst_10 [2] : vector<2x30x32xf32> to vector<2x30xf32>
    %15 = vector.shape_cast %14 : vector<2x30xf32> to vector<2x30x1xf32>
    %c0_11 = arith.constant 0 : index
    %c0_12 = arith.constant 0 : index
    %c0_13 = arith.constant 0 : index
    %16 = vector.load %arg4[%c0_11, %c0_12, %c0_13] : memref<2x1x32xf32, #tpu.memory_space<vmem>>, vector<2x1x32xf32>
    %17 = vector.broadcast %16 : vector<2x1x32xf32> to vector<2x30x32xf32>
    %18 = arith.mulf %8, %17 : vector<2x30x32xf32>
    %cst_14 = arith.constant dense<0.000000e+00> : vector<2x30xf32>
    %19 = vector.multi_reduction <add>, %18, %cst_14 [2] : vector<2x30x32xf32> to vector<2x30xf32>
    %20 = vector.shape_cast %19 : vector<2x30xf32> to vector<2x30x1xf32>
    %cst_15 = arith.constant dense<0.000000e+00> : vector<2x30xf32>
    %21 = vector.multi_reduction <add>, %5, %cst_15 [2] : vector<2x30x32xf32> to vector<2x30xf32>
    %22 = vector.shape_cast %21 : vector<2x30xf32> to vector<2x30x1xf32>
    %cst_16 = arith.constant 2.000000e+00 : f32
    %23 = vector.broadcast %cst_16 : f32 to vector<2x30x1xf32>
    %24 = arith.mulf %23, %20 : vector<2x30x1xf32>
    %25 = arith.subf %15, %24 : vector<2x30x1xf32>
    %c0_17 = arith.constant 0 : index
    %c0_18 = arith.constant 0 : index
    %c0_19 = arith.constant 0 : index
    %26 = vector.load %arg5[%c0_17, %c0_18, %c0_19] : memref<2x1x1xf32, #tpu.memory_space<vmem>>, vector<2x1x1xf32>
    %27 = vector.broadcast %26 : vector<2x1x1xf32> to vector<2x30x1xf32>
    %28 = arith.addf %25, %27 : vector<2x30x1xf32>
    %cst_20 = arith.constant 3.906250e-03 : f32
    %29 = vector.broadcast %cst_20 : f32 to vector<2x30x1xf32>
    %30 = arith.mulf %28, %29 : vector<2x30x1xf32>
    %cst_21 = arith.constant 0.00999999977 : f32
    %31 = vector.broadcast %cst_21 : f32 to vector<2x30x1xf32>
    %32 = arith.mulf %31, %22 : vector<2x30x1xf32>
    %33 = arith.addf %30, %32 : vector<2x30x1xf32>
    %c0_22 = arith.constant 0 : index
    %c0_23 = arith.constant 0 : index
    %c0_24 = arith.constant 0 : index
    %34 = vector.load %arg7[%c0_22, %c0_23, %c0_24] : memref<2x30x1xf32, #tpu.memory_space<vmem>>, vector<2x30x1xf32>
    tpu.vector_store %arg7[%c0_22, %c0_23, %c0_24], %33 {strides = array<i32>} : memref<2x30x1xf32, #tpu.memory_space<vmem>>, vector<2x30x1xf32>,
    %35 = math.log %0 : vector<2x1x32xf32>
    %cst_25 = arith.constant 0.000000e+00 : f32
    %36 = vector.broadcast %cst_25 : f32 to vector<2x1x32xf32>
    %37 = arith.subf %36, %0 : vector<2x1x32xf32>
    %38 = math.log1p %37 : vector<2x1x32xf32>
    %39 = arith.subf %35, %38 : vector<2x1x32xf32>
    %40 = vector.broadcast %39 : vector<2x1x32xf32> to vector<2x30x32xf32>
    %41 = arith.mulf %5, %40 : vector<2x30x32xf32>
    %cst_26 = arith.constant dense<0.000000e+00> : vector<2x30xf32>
    %42 = vector.multi_reduction <add>, %41, %cst_26 [2] : vector<2x30x32xf32> to vector<2x30xf32>
    %43 = vector.shape_cast %42 : vector<2x30xf32> to vector<2x30x1xf32>
    %cst_27 = arith.constant dense<0.000000e+00> : vector<2x1xf32>
    %44 = vector.multi_reduction <add>, %38, %cst_27 [2] : vector<2x1x32xf32> to vector<2x1xf32>
    %45 = vector.shape_cast %44 : vector<2x1xf32> to vector<2x1x1xf32>
    %46 = vector.broadcast %45 : vector<2x1x1xf32> to vector<2x30x1xf32>
    %47 = arith.addf %43, %46 : vector<2x30x1xf32>
    %c0_28 = arith.constant 0 : index
    %c0_29 = arith.constant 0 : index
    %c0_30 = arith.constant 0 : index
    %48 = vector.load %arg8[%c0_28, %c0_29, %c0_30] : memref<2x30x1xf32, #tpu.memory_space<vmem>>, vector<2x30x1xf32>
    tpu.vector_store %arg8[%c0_28, %c0_29, %c0_30], %47 {strides = array<i32>} : memref<2x30x1xf32, #tpu.memory_space<vmem>>, vector<2x30x1xf32>,
    return
  }
  func.func @transform_0(%arg0: i32) -> (i32, i32, i32) {
    %c0_i32 = arith.constant 0 : i32
    %c0_i32_0 = arith.constant 0 : i32
    %c0_i32_1 = arith.constant 0 : i32
    return %arg0, %c0_i32, %c0_i32_0 : i32, i32, i32
  }
  func.func @transform_1(%arg0: i32) -> (i32, i32, i32) {
    %c0_i32 = arith.constant 0 : i32
    %c0_i32_0 = arith.constant 0 : i32
    %c0_i32_1 = arith.constant 0 : i32
    return %arg0, %c0_i32, %c0_i32_0 : i32, i32, i32
  }
  func.func @transform_2(%arg0: i32) -> (i32, i32, i32) {
    %c0_i32 = arith.constant 0 : i32
    %c0_i32_0 = arith.constant 0 : i32
    %c0_i32_1 = arith.constant 0 : i32
    return %arg0, %c0_i32, %c0_i32_0 : i32, i32, i32
  }
  func.func @transform_3(%arg0: i32) -> (i32, i32, i32) {
    %c0_i32 = arith.constant 0 : i32
    %c0_i32_0 = arith.constant 0 : i32
    %c0_i32_1 = arith.constant 0 : i32
    return %arg0, %c0_i32, %c0_i32_0 : i32, i32, i32
  }
  func.func @transform_4(%arg0: i32) -> (i32, i32, i32) {
    %c0_i32 = arith.constant 0 : i32
    %c0_i32_0 = arith.constant 0 : i32
    %c0_i32_1 = arith.constant 0 : i32
    return %arg0, %c0_i32, %c0_i32_0 : i32, i32, i32
  }
  func.func @transform_5(%arg0: i32) -> (i32, i32) {
    %c0_i32 = arith.constant 0 : i32
    %c0_i32_0 = arith.constant 0 : i32
    %c0_i32_1 = arith.constant 0 : i32
    return %c0_i32, %c0_i32_0 : i32, i32
  }
  func.func @transform_6(%arg0: i32) -> (i32, i32, i32) {
    %c0_i32 = arith.constant 0 : i32
    %c0_i32_0 = arith.constant 0 : i32
    %c0_i32_1 = arith.constant 0 : i32
    return %arg0, %c0_i32, %c0_i32_0 : i32, i32, i32
  }
  func.func @transform_7(%arg0: i32) -> (i32, i32, i32) {
    %c0_i32 = arith.constant 0 : i32
    %c0_i32_0 = arith.constant 0 : i32
    %c0_i32_1 = arith.constant 0 : i32
    return %arg0, %c0_i32, %c0_i32_0 : i32, i32, i32
  }
}

</mosaic_0001>

<bundles_post_ra>
// kernel: tpu_custom_call.1
= control target key start
LH: loop header
LB: loop body
LE: loop exit
PB: predicated region body
PF: predicated region fallthrough
CT: control target
= control target key end

     0   :  { %v37_v0 = vlaneseq  ;;  %vm97_vm0 = vcmask 261120   ;;  %v651_v23 = vmov 0.0   ;;  %vm309_vm9 = vcmask 259072   ;;  %s1027_s5 = inlined_call_operand.vmem [shape: f32[32,32], index: 5, kind: input, shape index: {}]   ;;  %s1028_s0 = inlined_call_operand.vmem [shape: f32[2,1,32], index: 0, kind: input, shape index: {}]   ;;  %s1029_s1 = inlined_call_operand.vmem [shape: f32[2,30,32], index: 1, kind: input, shape index: {}]   ;;  %s1030_s2 = inlined_call_operand.vmem [shape: f32[2,1,32], index: 2, kind: input, shape index: {}]   ;;  %s1031_s3 = inlined_call_operand.vmem [shape: f32[2,1,32], index: 3, kind: input, shape index: {}]   ;;  %s1032_s7 = inlined_call_operand.vmem [shape: f32[2,30,1], index: 7, kind: output, shape index: {1}]   ;;  %s1033_s4 = inlined_call_operand.vmem [shape: f32[2,1,1], index: 4, kind: input, shape index: {}]   ;;  %s1034_s6 = inlined_call_operand.vmem [shape: f32[2,30,1], index: 6, kind: output, shape index: {0}]  }
   0x1   :  { %v96_v1 = vld [vmem:[%s1027_s5 + $0x18] sm:$0xff]  ;;  %v95_v2 = vld [vmem:[%s1027_s5 + $0x10] sm:$0xff]  ;;  %v94_v4 = vld [vmem:[%s1027_s5 + $0x8] sm:$0xff]  ;;  %vm537_vm12 = vcmask 253952   ;;  %vm457_vm13 = vcmask 7168   ;;  %vm461_vm14 = vcmask 5120  }
   0x2   :  { %614 = vmatprep.subr.mxu0 %v96_v1  ;;  %628 = vmatprep.subr.mxu1 %v96_v1  ;;  %v38_v3 = vshrl.u32 %v37_v0, 7  ;;  %v704_v5 = vld [vmem:[%s1028_s0] sm:$0x1]  ;;  %v709_v6 = vld [vmem:[%s1028_s0 + $0x1] sm:$0x1]  ;;  %v28_v11 = vld [vmem:[%s1029_s1 + $0x8] sm:$0xff] }
   0x3   :  { %615 = vmatpush3.msra.mxu0 %v96_v1  ;;  %629 = vmatpush3.msra.mxu1 %v96_v1  ;;  %v93_v7 = vld [vmem:[%s1027_s5] sm:$0xff]  ;;  %v717_v9 = vsub.f32 0.0, %v704_v5  ;;  %v32_v15 = vld [vmem:[%s1029_s1 + $0x28] sm:$0xff]  ;;  %v742_v18 = vsub.f32 0.0, %v709_v6  ;;  %v29_v19 = vld [vmem:[%s1029_s1 + $0x10] sm:$0xff] }
   0x4   :  { %616 = vmatprep.subr.mxu0 %v95_v2  ;;  %630 = vmatprep.subr.mxu1 %v95_v2  ;;  %v714_v8 = vsub.s32 0, %v38_v3  ;;  %v27_v10 = vld [vmem:[%s1029_s1] sm:$0xff]  ;;  %v30_v20 = vld [vmem:[%s1029_s1 + $0x18] sm:$0x3f]  ;;  %v33_v21 = vld [vmem:[%s1029_s1 + $0x30] sm:$0xff] }
   0x5   :  { %617 = vmatpush3.msra.mxu0 %v95_v2  ;;  %631 = vmatpush3.msra.mxu1 %v95_v2  ;;  %v31_v12 = vld [vmem:[%s1029_s1 + $0x20] sm:$0xff]  ;;  %v473_v22 = vadd.f32 1.0, %v717_v9  ;;  %v34_v27 = vld [vmem:[%s1029_s1 + $0x38] sm:$0x3f]  ;;  %v482_v48 = vadd.f32 1.0, %v742_v18  ;;  %v485_v58 = vmul.f32 -0.5, %v742_v18 }
   0x6   :  { %618 = vmatprep.subr.mxu0 %v94_v4  ;;  %632 = vmatprep.subr.mxu1 %v94_v4  ;;  %v40_v13 = vrot.slane %v704_v5, %v714_v8  ;;  %v44_v14 = vrot.slane %v709_v6, %v714_v8  ;;  %v584_v16 = vld [vmem:[%s1030_s2] ss:$0 sm:$0xff]  ;;  %v585_v17 = vld [vmem:[%s1030_s2 + $0x1] ss:$0 sm:$0xff]  ;;  %v476_v59 = vmul.f32 -0.5, %v717_v9 }
   0x7   :  { %619 = vmatpush3.msra.mxu0 %v94_v4  ;;  %633 = vmatpush3.msra.mxu1 %v94_v4  ;;  %v594_v33 = vld [vmem:[%s1031_s3] ss:$0 sm:$0xff]  ;;  %v595_v47 = vld [vmem:[%s1031_s3 + $0x1] ss:$0 sm:$0xff]  ;;  %643 = vlog2.f32 %v473_v22  ;;  %v486_v62 = vadd.f32 1.0, %v485_v58 }
   0x8   :  { %620 = vmatprep.subr.mxu0 %v93_v7  ;;  %vm47_vm1 = vcmp.gt.f32.partialorder %v40_v13, %v27_v10  ;;  %vm48_vm2 = vcmp.gt.f32.partialorder %v40_v13, %v28_v11  ;;  %634 = vmatprep.subr.mxu1 %v93_v7  ;;  %vm51_vm3 = vcmp.gt.f32.partialorder %v44_v14, %v31_v12  ;;  %645 = vlog2.f32 %v709_v6 }
   0x9   :  { %621 = vmatpush3.msra.mxu0 %v93_v7  ;;  %v754_v24 = vsel %vm47_vm1, 1.0, %v651_v23  ;;  %v756_v25 = vsel %vm48_vm2, 1.0, %v651_v23  ;;  %635 = vmatpush3.msra.mxu1 %v93_v7  ;;  %v758_v26 = vsel %vm51_vm3, 1.0, %v651_v23  ;;  %vm52_vm4 = vcmp.gt.f32.partialorder %v44_v14, %v32_v15 }
   0xa   :  { %v764_v28 = vmul.f32 %v584_v16, %v754_v24  ;;  %v767_v29 = vmul.f32 %v584_v16, %v756_v25  ;;  %v770_v30 = vmul.f32 %v585_v17, %v758_v26  ;;  %v772_v31 = vsel %vm52_vm4, 1.0, %v651_v23 }
   0xb   :  { %v775_v32 = vmul.f32 %v585_v17, %v772_v31  ;;  %vm49_vm5 = vcmp.gt.f32.partialorder %v40_v13, %v29_v19  ;;  %vm50_vm6 = vcmp.gt.f32.partialorder %v40_v13, %v30_v20  ;;  %vm53_vm7 = vcmp.gt.f32.partialorder %v44_v14, %v33_v21 }
   0xc   :  { %622 = vmatprep.mubr.msk.f32.mxu0 %vm97_vm0, %v764_v28  ;;  %636 = vmatprep.mubr.msk.f32.mxu1 %vm97_vm0, %v770_v30  ;;  %v784_v34 = vsel %vm49_vm5, 1.0, %v651_v23  ;;  %v786_v35 = vsel %vm50_vm6, 1.0, %v651_v23  ;;  %v788_v36 = vsel %vm53_vm7, 1.0, %v651_v23  ;;  %vm54_vm8 = vcmp.gt.f32.partialorder %v44_v14, %v34_v27 }
   0xd   :  { %623 = vmatmul.mubr.msk.f32.vlgmr.msra.gmra.mxu0 %vm97_vm0, %v767_v29  ;;  %637 = vmatmul.mubr.msk.f32.vlgmr.msra.gmra.mxu1 %vm97_vm0, %v775_v32  ;;  %v795_v37 = vmul.f32 %v584_v16, %v784_v34  ;;  %v798_v38 = vmul.f32 %v584_v16, %v786_v35  ;;  %v801_v39 = vmul.f32 %v585_v17, %v788_v36  ;;  %v803_v40 = vsel %vm54_vm8, 1.0, %v651_v23 }
   0xe   :  { %v806_v41 = vmul.f32 %v585_v17, %v803_v40  ;;  %v339_v42 = vmul.f32 %v594_v33, %v764_v28  ;;  %v340_v45 = vmul.f32 %v594_v33, %v767_v29  ;;  %647 = vlog2.f32 %v704_v5 }
   0xf   :  { %625 = vmatprep.mubr.msk.f32.mxu0 %vm97_vm0, %v795_v37  ;;  %639 = vmatprep.mubr.msk.f32.mxu1 %vm97_vm0, %v801_v39  ;;  %v341_v43 = vmul.f32 %v594_v33, %v795_v37  ;;  %v342_v44 = vmul.f32 %v594_v33, %v798_v38  ;;  %v344_v52 = vmul.f32 %v595_v47, %v775_v32  ;;  %649 = vlog2.f32 %v482_v48 }
  0x10   :  { %v347_v46 = vsel %vm97_vm0, %v339_v42, 0.0  ;;  %v350_v51 = vsel %vm97_vm0, %v340_v45, 0.0  ;;  %v343_v53 = vmul.f32 %v595_v47, %v770_v30  ;;  %v346_v56 = vmul.f32 %v595_v47, %v806_v41 }
  0x11   :  { %626 = vmatmul.mubr.msk.f32.gmra.mxu0 %vm97_vm0, %v798_v38  ;;  %640 = vmatmul.mubr.msk.f32.gmra.mxu1 %vm97_vm0, %v806_v41  ;;  %v353_v49 = vsel %vm97_vm0, %v341_v43, 0.0  ;;  %v356_v50 = vsel %vm309_vm9, %v342_v44, 0.0  ;;  %v362_v54 = vsel %vm97_vm0, %v344_v52, 0.0  ;;  %v345_v57 = vmul.f32 %v595_v47, %v801_v39 }
  0x12   :  { %354 = vadd.xlane.f32.xlu1 %v353_v49  ;;  %348 = vadd.xlane.f32.xlu0 %v347_v46  ;;  %v359_v55 = vsel %vm97_vm0, %v343_v53, 0.0  ;;  %v368_v60 = vsel %vm309_vm9, %v346_v56, 0.0  ;;  %v477_v63 = vadd.f32 1.0, %v476_v59  ;;  %v488_v1 = vand.u32 2147483647, %v742_v18 }
  0x13   :  { %v365_v61 = vsel %vm97_vm0, %v345_v57, 0.0  ;;  %v479_v2 = vand.u32 2147483647, %v717_v9  ;;  %v374_v5 = vsel %vm97_vm0, %v756_v25, 0.0  ;;  %v371_v6 = vsel %vm97_vm0, %v754_v24, 0.0 }
  0x14   :  { %v644_v0 = vpop.eup %643  ;;  %v487_v7 = vmul.f32 %v486_v62, %v742_v18  ;;  %v478_v11 = vmul.f32 %v477_v63, %v717_v9  ;;  %vm489_vm10 = vcmp.lt.f32.partialorder %v488_v1, 0.0004427343  ;;  %v380_v15 = vsel %vm309_vm9, %v786_v35, 0.0 }
  0x15   :  { %v646_v3 = vpop.eup %645  ;;  %v475_v10 = vmul.f32 0.6931472, %v644_v0  ;;  %vm480_vm11 = vcmp.lt.f32.partialorder %v479_v2, 0.0004427343  ;;  %v377_v16 = vsel %vm97_vm0, %v784_v34, 0.0  ;;  %v386_v20 = vsel %vm97_vm0, %v772_v31, 0.0 }
  0x16   :  { %357 = vadd.xlane.f32.xlu1 %v356_v50  ;;  %351 = vadd.xlane.f32.xlu0 %v350_v51  ;;  %v848_v13 = vmul.f32 0.6931472, %v646_v3  ;;  %v383_v21 = vsel %vm97_vm0, %v758_v26, 0.0  ;;  %v392_v23 = vsel %vm309_vm9, %v803_v40, 0.0  ;;  %v389_v27 = vsel %vm97_vm0, %v788_v36, 0.0 }
  0x17   :  { %v481_v18 = vsel %vm480_vm11, %v478_v11, %v475_v10 }
  0x18   :  { %v538_v43 = vsel %vm537_vm12, %v481_v18, 0.0 }
  0x1a   :  { %363 = vadd.xlane.f32.xlu1 %v362_v54  ;;  %360 = vadd.xlane.f32.xlu0 %v359_v55 }
  0x1b   :  { %v648_v4 = vpop.eup %647 }
  0x1c   :  { %v650_v12 = vpop.eup %649  ;;  %v468_v17 = vmul.f32 0.6931472, %v648_v4 }
  0x1d   :  { %v484_v14 = vmul.f32 0.6931472, %v650_v12 }
  0x1e   :  { %369 = vadd.xlane.f32.xlu1 %v368_v60  ;;  %366 = vadd.xlane.f32.xlu0 %v365_v61  ;;  %v491_v22 = vsub.f32 %v468_v17, %v481_v18 }
  0x1f   :  { %v854_v19 = vsel %vm489_vm10, %v487_v7, %v484_v14 }
  0x20   :  { %v492_v9 = vsub.f32 %v848_v13, %v854_v19  ;;  %v498_v33 = vrot.slane %v491_v22, %v714_v8  ;;  %v541_v42 = vsel %vm537_vm12, %v854_v19, 0.0 }
  0x22   :  { %375 = vadd.xlane.f32.xlu1 %v374_v5  ;;  %372 = vadd.xlane.f32.xlu0 %v371_v6  ;;  %v506_v44 = vmul.f32 %v756_v25, %v498_v33  ;;  %v505_v45 = vmul.f32 %v754_v24, %v498_v33  ;;  %v508_v48 = vmul.f32 %v786_v35, %v498_v33 }
  0x23   :  { %v507_v49 = vmul.f32 %v784_v34, %v498_v33 }
  0x24   :  { %v516_v46 = vsel %vm97_vm0, %v506_v44, 0.0  ;;  %v513_v47 = vsel %vm97_vm0, %v505_v45, 0.0  ;;  %v522_v50 = vsel %vm309_vm9, %v508_v48, 0.0 }
  0x25   :  { %v519_v51 = vsel %vm97_vm0, %v507_v49, 0.0 }
  0x26   :  { %381 = vadd.xlane.f32.xlu1 %v380_v15  ;;  %378 = vadd.xlane.f32.xlu0 %v377_v16 }
  0x2a   :  { %387 = vadd.xlane.f32.xlu1 %v386_v20  ;;  %384 = vadd.xlane.f32.xlu0 %v383_v21 }
  0x2e   :  { %393 = vadd.xlane.f32.xlu1 %v392_v23  ;;  %390 = vadd.xlane.f32.xlu0 %v389_v27 }
  0x32   :  { %542 = vadd.xlane.f32.xlu1 %v541_v42  ;;  %539 = vadd.xlane.f32.xlu0 %v538_v43 }
  0x36   :  { %517 = vadd.xlane.f32.xlu1 %v516_v46  ;;  %514 = vadd.xlane.f32.xlu0 %v513_v47 }
  0x3a   :  { %523 = vadd.xlane.f32.xlu1 %v522_v50  ;;  %520 = vadd.xlane.f32.xlu0 %v519_v51 }
  0x9b   :  { %v876_v25 = vpop.xlane.xlu1 %354  ;;  %v878_v24 = vpop.xlane.xlu0 %348 }
  0x9f   :  { %v880_v52 = vpop.xlane.xlu1 %357  ;;  %v882_v53 = vpop.xlane.xlu0 %351 }
  0xa3   :  { %v884_v54 = vpop.xlane.xlu1 %363  ;;  %v886_v35 = vpop.xlane.xlu0 %360 }
  0xa7   :  { %v888_v34 = vpop.xlane.xlu1 %369  ;;  %v890_v55 = vpop.xlane.xlu0 %366 }
  0xab   :  { %v892_v56 = vpop.xlane.xlu1 %375  ;;  %v894_v57 = vpop.xlane.xlu0 %372 }
  0xaf   :  { %v896_v58 = vpop.xlane.xlu1 %381  ;;  %v898_v59 = vpop.xlane.xlu0 %378 }
  0xb3   :  { %v900_v60 = vpop.xlane.xlu1 %387  ;;  %v902_v61 = vpop.xlane.xlu0 %384 }
  0xb7   :  { %v904_v62 = vpop.xlane.xlu1 %393  ;;  %v906_v63 = vpop.xlane.xlu0 %390 }
  0xbb   :  { %v908_v0 = vpop.xlane.xlu1 %542  ;;  %v540_v1 = vpop.xlane.xlu0 %539 }
  0xbc   :  { %v547_v2 = vrot.slane %v540_v1, %v714_v8  ;;  %v596_v1 = vld [vmem:[%s1033_s4] ss:$0 sm:$0xff] }
  0xbf   :  { %v518_v3 = vpop.xlane.xlu1 %517  ;;  %v515_v4 = vpop.xlane.xlu0 %514 }
  0xc0   :  { %v553_v5 = vadd.f32 %v547_v2, %v518_v3  ;;  %v552_v6 = vadd.f32 %v547_v2, %v515_v4 }
  0xc2   :  { %561 = vst.msk [vmem:[%s1032_s7 + $0x8] sm:$0xff] %vm457_vm13, %v553_v5  ;;  %560 = vst.msk [vmem:[%s1032_s7] sm:$0xff] %vm457_vm13, %v552_v6 }
  0xc3   :  { %v524_v7 = vpop.xlane.xlu1 %523  ;;  %v521_v10 = vpop.xlane.xlu0 %520 }
  0xc4   :  { %v555_v11 = vadd.f32 %v547_v2, %v524_v7  ;;  %v554_v12 = vadd.f32 %v547_v2, %v521_v10  ;;  %v395_v2 = vmul.f32 2.0, %v878_v24  ;;  %v399_v7 = vmul.f32 2.0, %v886_v35  ;;  %v597_v10 = vld [vmem:[%s1033_s4 + $0x1] ss:$0 sm:$0xff] }
  0xc5   :  { %v398_v24 = vmul.f32 2.0, %v880_v52  ;;  %v397_v35 = vmul.f32 2.0, %v876_v25 }
  0xc6   :  { %563 = vst.msk [vmem:[%s1032_s7 + $0x18] sm:$0x3f] %vm461_vm14, %v555_v11  ;;  %v442_v11 = vmul.f32 0.01, %v892_v56 }
  0xc7   :  { %562 = vst.msk [vmem:[%s1032_s7 + $0x10] sm:$0xff] %vm457_vm13, %v554_v12 }
  0xcd   :  { %v624_v14 = vpop.f32.mrf.mxu0  ;;  %v638_v15 = vpop.f32.mrf.mxu1 }
  0xce   :  { %v293_v16 = vmul.f32 %v624_v14, %v767_v29  ;;  %v297_v17 = vmul.f32 %v638_v15, %v775_v32 }
  0xcf   :  { %v176_v18 = vpop.f32.mrf.mxu0  ;;  %v273_v20 = vpop.f32.mrf.mxu1 }
  0xd0   :  { %v292_v21 = vmul.f32 %v176_v18, %v764_v28  ;;  %v303_v22 = vsel %vm97_vm0, %v293_v16, 0.0  ;;  %v296_v27 = vmul.f32 %v273_v20, %v770_v30  ;;  %v316_v43 = vsel %vm97_vm0, %v297_v17, 0.0 }
  0xd1   :  { %304 = vadd.xlane.f32.xlu1 %v303_v22  ;;  %v627_v23 = vpop.f32.mrf.mxu0  ;;  %v641_v44 = vpop.f32.mrf.mxu1  ;;  %v502_v28 = vrot.slane %v492_v9, %v714_v8  ;;  %v441_v16 = vmul.f32 0.01, %v894_v57  ;;  %v446_v22 = vmul.f32 0.01, %v900_v60  ;;  %v402_v57 = vmul.f32 2.0, %v888_v34 }
  0xd2   :  { %v300_v33 = vsel %vm97_vm0, %v292_v21, 0.0  ;;  %v295_v42 = vmul.f32 %v627_v23, %v798_v38  ;;  %v299_v45 = vmul.f32 %v641_v44, %v806_v41  ;;  %v313_v30 = vsel %vm97_vm0, %v296_v27, 0.0 }
  0xd3   :  { %301 = vadd.xlane.f32.xlu0 %v300_v33  ;;  %v186_v29 = vpop.f32.mrf.mxu0  ;;  %v283_v38 = vpop.f32.mrf.mxu1  ;;  %v510_v13 = vmul.f32 %v772_v31, %v502_v28  ;;  %v512_v9 = vmul.f32 %v803_v40, %v502_v28 }
  0xd4   :  { %v294_v32 = vmul.f32 %v186_v29, %v795_v37  ;;  %v310_v46 = vsel %vm309_vm9, %v295_v42, 0.0  ;;  %v298_v47 = vmul.f32 %v283_v38, %v801_v39  ;;  %v322_v49 = vsel %vm309_vm9, %v299_v45, 0.0 }
  0xd5   :  { %317 = vadd.xlane.f32.xlu1 %v316_v43  ;;  %v509_v37 = vmul.f32 %v758_v26, %v502_v28  ;;  %v528_v19 = vsel %vm97_vm0, %v510_v13, 0.0  ;;  %v511_v39 = vmul.f32 %v788_v36, %v502_v28  ;;  %v534_v51 = vsel %vm309_vm9, %v512_v9, 0.0 }
  0xd6   :  { %v306_v48 = vsel %vm97_vm0, %v294_v32, 0.0  ;;  %v319_v41 = vsel %vm97_vm0, %v298_v47, 0.0  ;;  %v396_v26 = vmul.f32 2.0, %v882_v53  ;;  %v400_v36 = vmul.f32 2.0, %v884_v54 }
  0xd7   :  { %314 = vadd.xlane.f32.xlu0 %v313_v30  ;;  %v525_v50 = vsel %vm97_vm0, %v509_v37, 0.0  ;;  %v531_v31 = vsel %vm97_vm0, %v511_v39, 0.0  ;;  %v445_v42 = vmul.f32 0.01, %v902_v61  ;;  %v401_v28 = vmul.f32 2.0, %v890_v55 }
  0xd8   :  { %v444_v32 = vmul.f32 0.01, %v896_v58  ;;  %v443_v38 = vmul.f32 0.01, %v898_v59  ;;  %v551_v47 = vrot.slane %v908_v0, %v714_v8  ;;  %v448_v37 = vmul.f32 0.01, %v904_v62 }
  0xd9   :  { %311 = vadd.xlane.f32.xlu1 %v310_v46 }
  0xdb   :  { %307 = vadd.xlane.f32.xlu0 %v306_v48 }
  0xdd   :  { %323 = vadd.xlane.f32.xlu1 %v322_v49 }
  0xdf   :  { %320 = vadd.xlane.f32.xlu0 %v319_v41 }
  0xe1   :  { %529 = vadd.xlane.f32.xlu1 %v528_v19 }
  0xe3   :  { %526 = vadd.xlane.f32.xlu0 %v525_v50  ;;  %v447_v50 = vmul.f32 0.01, %v906_v63 }
  0xe5   :  { %535 = vadd.xlane.f32.xlu1 %v534_v51 }
  0xe7   :  { %532 = vadd.xlane.f32.xlu0 %v531_v31 }
 0x15a   :  { %v305_v40 = vpop.xlane.xlu1 %304 }
 0x15b   :  { %v404_v3 = vsub.f32 %v305_v40, %v396_v26 }
 0x15c   :  { %v302_v4 = vpop.xlane.xlu0 %301 }
 0x15d   :  { %v426_v5 = vadd.f32 %v596_v1, %v404_v3  ;;  %v403_v6 = vsub.f32 %v302_v4, %v395_v2 }
 0x15e   :  { %v318_v53 = vpop.xlane.xlu1 %317 }
 0x15f   :  { %v434_v12 = vmul.f32 0.00390625, %v426_v5  ;;  %v425_v14 = vadd.f32 %v596_v1, %v403_v6  ;;  %v408_v15 = vsub.f32 %v318_v53, %v400_v36 }
 0x160   :  { %v315_v17 = vpop.xlane.xlu0 %314 }
 0x161   :  { %v450_v54 = vadd.f32 %v442_v11, %v434_v12  ;;  %v433_v18 = vmul.f32 0.00390625, %v425_v14  ;;  %v430_v20 = vadd.f32 %v597_v10, %v408_v15  ;;  %v407_v21 = vsub.f32 %v315_v17, %v399_v7 }
 0x162   :  { %v312_v23 = vpop.xlane.xlu1 %311 }
 0x163   :  { %459 = vst.msk [vmem:[%s1034_s6 + $0x8] sm:$0xff] %vm457_vm13, %v450_v54  ;;  %v449_v56 = vadd.f32 %v441_v16, %v433_v18  ;;  %v438_v27 = vmul.f32 0.00390625, %v430_v20  ;;  %v429_v52 = vadd.f32 %v597_v10, %v407_v21  ;;  %v406_v33 = vsub.f32 %v312_v23, %v398_v24 }
 0x164   :  { %v308_v43 = vpop.xlane.xlu0 %307 }
 0x165   :  { %458 = vst.msk [vmem:[%s1034_s6] sm:$0xff] %vm457_vm13, %v449_v56  ;;  %v454_v25 = vadd.f32 %v446_v22, %v438_v27  ;;  %v437_v60 = vmul.f32 0.00390625, %v429_v52  ;;  %v428_v29 = vadd.f32 %v596_v1, %v406_v33  ;;  %v405_v44 = vsub.f32 %v308_v43, %v397_v35 }
 0x166   :  { %v324_v45 = vpop.xlane.xlu1 %323 }
 0x167   :  { %464 = vst.msk [vmem:[%s1034_s6 + $0x28] sm:$0xff] %vm457_vm13, %v454_v25  ;;  %v453_v34 = vadd.f32 %v445_v42, %v437_v60  ;;  %v436_v61 = vmul.f32 0.00390625, %v428_v29  ;;  %v427_v30 = vadd.f32 %v596_v1, %v405_v44  ;;  %v410_v46 = vsub.f32 %v324_v45, %v402_v57 }
 0x168   :  { %v321_v48 = vpop.xlane.xlu0 %320 }
 0x169   :  { %463 = vst.msk [vmem:[%s1034_s6 + $0x20] sm:$0xff] %vm457_vm13, %v453_v34  ;;  %v452_v55 = vadd.f32 %v444_v32, %v436_v61  ;;  %v435_v58 = vmul.f32 0.00390625, %v427_v30  ;;  %v432_v49 = vadd.f32 %v597_v10, %v410_v46  ;;  %v409_v13 = vsub.f32 %v321_v48, %v401_v28 }
 0x16a   :  { %v530_v41 = vpop.xlane.xlu1 %529 }
 0x16b   :  { %462 = vst.msk [vmem:[%s1034_s6 + $0x18] sm:$0x3f] %vm461_vm14, %v452_v55  ;;  %v451_v59 = vadd.f32 %v443_v38, %v435_v58  ;;  %v440_v8 = vmul.f32 0.00390625, %v432_v49  ;;  %v431_v0 = vadd.f32 %v597_v10, %v409_v13  ;;  %v557_v19 = vadd.f32 %v551_v47, %v530_v41 }
 0x16c   :  { %v527_v9 = vpop.xlane.xlu0 %526 }
 0x16d   :  { %460 = vst.msk [vmem:[%s1034_s6 + $0x10] sm:$0xff] %vm457_vm13, %v451_v59  ;;  %v456_v39 = vadd.f32 %v448_v37, %v440_v8  ;;  %v439_v62 = vmul.f32 0.00390625, %v431_v0  ;;  %565 = vst.msk [vmem:[%s1032_s7 + $0x28] sm:$0xff] %vm457_vm13, %v557_v19  ;;  %v556_v51 = vadd.f32 %v551_v47, %v527_v9 }
 0x16e   :  { %v536_v31 = vpop.xlane.xlu1 %535 }
 0x16f   :  { %466 = vst.msk [vmem:[%s1034_s6 + $0x38] sm:$0x3f] %vm461_vm14, %v456_v39  ;;  %v455_v63 = vadd.f32 %v447_v50, %v439_v62  ;;  %v559_v26 = vadd.f32 %v551_v47, %v536_v31 }
 0x170   :  { %564 = vst.msk [vmem:[%s1032_s7 + $0x20] sm:$0xff] %vm457_vm13, %v556_v51  ;;  %v533_v1 = vpop.xlane.xlu0 %532 }
 0x171   :  { %465 = vst.msk [vmem:[%s1034_s6 + $0x30] sm:$0xff] %vm457_vm13, %v455_v63  ;;  %v558_v40 = vadd.f32 %v551_v47, %v533_v1 }
 0x172   :  { %567 = vst.msk [vmem:[%s1032_s7 + $0x38] sm:$0x3f] %vm461_vm14, %v559_v26 }
 0x173   :  { %566 = vst.msk [vmem:[%s1032_s7 + $0x30] sm:$0xff] %vm457_vm13, %v558_v40 }

</bundles_post_ra>
